<compile_context>
chip_gen: v7x
topology: tpu7x:2x2x1
jax: 0.10.0
libtpu: 0.0.40
codegen_flags: <defaults>
</compile_context>

<pallas_src>
import jax
import jax.numpy as jnp
from jax.experimental import pallas as pl
from jax.experimental.pallas import tpu as pltpu


def _round_up(x, m):
    return ((x + m - 1) // m) * m


def mlp_kernel(x_ref, w1_ref, b1_ref, w2_ref, b2_ref, w3_ref, b3_ref, o_ref):
    # Layer 1: (TM, D_in) @ (D_in, H) + (1, H) -> ReLU   (bf16 MXU inputs, f32 acc)
    x = x_ref[...].astype(jnp.bfloat16)
    h1 = jnp.dot(x, w1_ref[...], preferred_element_type=jnp.float32)
    h1 = jnp.maximum(h1 + b1_ref[...], 0.0)
    # Layer 2: (TM, H) @ (H, H) + (1, H) -> ReLU
    h2 = jnp.dot(h1.astype(jnp.bfloat16), w2_ref[...],
                 preferred_element_type=jnp.float32)
    h2 = jnp.maximum(h2 + b2_ref[...], 0.0)
    # Layer 3: (TM, H) @ (H, D_out_pad) + (1, D_out_pad)  -- D_out padded to 128
    out = jnp.dot(h2.astype(jnp.bfloat16), w3_ref[...],
                  preferred_element_type=jnp.float32)
    o_ref[...] = (out + b3_ref[...]).astype(o_ref.dtype)


def mlp_forward(x, params, *, tm_max=256):
    """3-layer MLP forward pass with a fused Pallas kernel, tiled over (padded) batch."""
    w1, b1, w2, b2, w3, b3 = params
    B, d_in = x.shape
    hidden = w1.shape[1]
    d_out = w3.shape[1]

    # --- Pad output dim to a lane-dense multiple of 128 (zero columns). ---
    d_out_p = _round_up(max(d_out, 128), 128)
    if d_out_p != d_out:
        w3 = jnp.pad(w3, ((0, 0), (0, d_out_p - d_out)))
        b3 = jnp.pad(b3, ((0, 0), (0, d_out_p - d_out)))

    # --- Pick an MXU-friendly batch tile; pad batch so the grid divides evenly. ---
    tm = min(tm_max, _round_up(B, 8))          # small batch -> single big tile
    B_pad = _round_up(B, tm)
    if B_pad != B:
        x = jnp.pad(x, ((0, B_pad - B), (0, 0)))

    # --- bf16 weights for native MXU rate (biases stay f32, added post-acc). ---
    w1b = w1.astype(jnp.bfloat16)
    w2b = w2.astype(jnp.bfloat16)
    w3b = w3.astype(jnp.bfloat16)

    grid = (B_pad // tm,)

    flops = 2 * B_pad * (d_in * hidden + hidden * hidden + hidden * d_out_p)
    bytes_accessed = (
        B_pad * d_in * 4                                            # x (f32 in)
        + (d_in * hidden + hidden * hidden + hidden * d_out_p) * 2  # bf16 weights
        + (2 * hidden + d_out_p) * 4                                # f32 biases
        + B_pad * d_out_p * 4                                       # f32 out
    )

    # NOTE(v7x scaling): at hidden_size=256 the resident weights are ~0.4 MiB, far
    # below the scoped-VMEM limit on every generation. If hidden_size is ever
    # scaled to >=2048, add a K-tiled "arbitrary" grid axis for W2 (and/or
    # pipeline_mode=pl.Buffered(1) on the grid-invariant weight specs) instead of
    # keeping W2 fully resident.
    out = pl.pallas_call(
        mlp_kernel,
        out_shape=jax.ShapeDtypeStruct((B_pad, d_out_p), jnp.float32),
        grid_spec=pltpu.PrefetchScalarGridSpec(
            num_scalar_prefetch=0,
            grid=grid,
            in_specs=[
                pl.BlockSpec((tm, d_in), lambda i: (i, 0)),        # x tile
                pl.BlockSpec((d_in, hidden), lambda i: (0, 0)),    # W1 (resident)
                pl.BlockSpec((1, hidden), lambda i: (0, 0)),       # b1
                pl.BlockSpec((hidden, hidden), lambda i: (0, 0)),  # W2 (resident)
                pl.BlockSpec((1, hidden), lambda i: (0, 0)),       # b2
                pl.BlockSpec((hidden, d_out_p), lambda i: (0, 0)), # W3 (resident)
                pl.BlockSpec((1, d_out_p), lambda i: (0, 0)),      # b3
            ],
            out_specs=pl.BlockSpec((tm, d_out_p), lambda i: (i, 0)),
        ),
        compiler_params=pltpu.CompilerParams(
            dimension_semantics=("parallel",),
        ),
        cost_estimate=pl.CostEstimate(
            flops=flops, transcendentals=0, bytes_accessed=bytes_accessed),
    )(x, w1b, b1, w2b, b2, w3b, b3)

    # Slice away the batch / output-dim padding.
    return out[:B, :d_out]


def init_params(key, input_dim, output_dim, hidden_size=256, dtype=jnp.float32):
    """Deterministic init mimicking PyTorch nn.Linear default (U[-1/sqrt(fan_in), +1/sqrt(fan_in)])."""
    def linear(key, fan_in, fan_out):
        kw, kb = jax.random.split(key)
        bound = 1.0 / (fan_in ** 0.5)
        w = jax.random.uniform(kw, (fan_in, fan_out), dtype, -bound, bound)
        b = jax.random.uniform(kb, (1, fan_out), dtype, -bound, bound)
        return w, b

    k1, k2, k3 = jax.random.split(key, 3)
    w1, b1 = linear(k1, input_dim, hidden_size)
    w2, b2 = linear(k2, hidden_size, hidden_size)
    w3, b3 = linear(k3, hidden_size, output_dim)
    return (w1, b1, w2, b2, w3, b3)


def mlp_reference(x, params):
    """Pure-JAX f32 reference (PyTorch-equivalent semantics)."""
    w1, b1, w2, b2, w3, b3 = params
    h1 = jnp.maximum(x @ w1 + b1, 0.0)
    h2 = jnp.maximum(h1 @ w2 + b2, 0.0)
    return h2 @ w3 + b3


if __name__ == "__main__":
    key = jax.random.PRNGKey(0)
    kx, kp = jax.random.split(key)

    batch = 50          # deliberately not a multiple of 8 -> exercises batch padding
    input_dim = 16      # e.g. concat(state, action) dim for IGDF
    output_dim = 1
    hidden_size = 256

    x = jax.random.normal(kx, (batch, input_dim), jnp.float32)
    params = init_params(kp, input_dim, output_dim, hidden_size)

    out = mlp_forward(x, params)
    out = jax.block_until_ready(out)

    ref = mlp_reference(x, params)
    assert out.shape == (batch, output_dim), out.shape
    # bf16 MXU inputs with f32 accumulation -> ~1e-3..1e-2 deviation from f32 ref.
    assert jnp.allclose(out, ref, atol=2e-2, rtol=2e-2), "mismatch vs reference"

    print("KERNEL_OK")
</pallas_src>

<mosaic_0001>
module attributes {stable_mosaic.version = 11 : i64} {
  func.func @mlp_kernel(%arg0: i32, %arg1: memref<56x16xf32, #tpu.memory_space<vmem>>, %arg2: memref<16x256xbf16, #tpu.memory_space<vmem>>, %arg3: memref<1x256xf32, #tpu.memory_space<vmem>>, %arg4: memref<256x256xbf16, #tpu.memory_space<vmem>>, %arg5: memref<1x256xf32, #tpu.memory_space<vmem>>, %arg6: memref<256x128xbf16, #tpu.memory_space<vmem>>, %arg7: memref<1x128xf32, #tpu.memory_space<vmem>>, %arg8: memref<56x128xf32, #tpu.memory_space<vmem>>) attributes {dimension_semantics = [#tpu.dimension_semantics<parallel>], iteration_bounds = array<i64: 1>, scalar_prefetch = 0 : i64, scratch_operands = 0 : i64, tpu.core_type = #tpu.core_type<tc>, window_params = [{transform_indices = @transform_0, window_bounds = array<i64: 56, 16>}, {pipeline_mode = #tpu.pipeline_mode<synchronous>, transform_indices = @transform_1, window_bounds = array<i64: 16, 256>}, {pipeline_mode = #tpu.pipeline_mode<synchronous>, transform_indices = @transform_2, window_bounds = array<i64: 1, 256>}, {pipeline_mode = #tpu.pipeline_mode<synchronous>, transform_indices = @transform_3, window_bounds = array<i64: 256, 256>}, {pipeline_mode = #tpu.pipeline_mode<synchronous>, transform_indices = @transform_4, window_bounds = array<i64: 1, 256>}, {pipeline_mode = #tpu.pipeline_mode<synchronous>, transform_indices = @transform_5, window_bounds = array<i64: 256, 128>}, {pipeline_mode = #tpu.pipeline_mode<synchronous>, transform_indices = @transform_6, window_bounds = array<i64: 1, 128>}, {transform_indices = @transform_7, window_bounds = array<i64: 56, 128>}]} {
    %c0 = arith.constant 0 : index
    %c0_0 = arith.constant 0 : index
    %0 = vector.load %arg1[%c0, %c0_0] : memref<56x16xf32, #tpu.memory_space<vmem>>, vector<56x16xf32>
    %1 = arith.truncf %0 : vector<56x16xf32> to vector<56x16xbf16>
    %c0_1 = arith.constant 0 : index
    %c0_2 = arith.constant 0 : index
    %2 = vector.load %arg2[%c0_1, %c0_2] : memref<16x256xbf16, #tpu.memory_space<vmem>>, vector<16x256xbf16>
    %cst = arith.constant dense<0.000000e+00> : vector<56x256xf32>
    %3 = tpu.matmul %1, %2, %cst {dimension_numbers = #tpu.dot_dimension_numbers<[1], [0], [0], [1], [0, 0, 1, 1], [], []>} : vector<56x16xbf16>, vector<16x256xbf16>, vector<56x256xf32> -> vector<56x256xf32>
    %c0_3 = arith.constant 0 : index
    %c0_4 = arith.constant 0 : index
    %4 = vector.load %arg3[%c0_3, %c0_4] : memref<1x256xf32, #tpu.memory_space<vmem>>, vector<1x256xf32>
    %5 = vector.broadcast %4 : vector<1x256xf32> to vector<56x256xf32>
    %6 = arith.addf %3, %5 : vector<56x256xf32>
    %cst_5 = arith.constant 0.000000e+00 : f32
    %7 = vector.broadcast %cst_5 : f32 to vector<56x256xf32>
    %8 = arith.maximumf %6, %7 : vector<56x256xf32>
    %9 = arith.truncf %8 : vector<56x256xf32> to vector<56x256xbf16>
    %c0_6 = arith.constant 0 : index
    %c0_7 = arith.constant 0 : index
    %10 = vector.load %arg4[%c0_6, %c0_7] : memref<256x256xbf16, #tpu.memory_space<vmem>>, vector<256x256xbf16>
    %cst_8 = arith.constant dense<0.000000e+00> : vector<56x256xf32>
    %11 = tpu.matmul %9, %10, %cst_8 {dimension_numbers = #tpu.dot_dimension_numbers<[1], [0], [0], [1], [0, 0, 1, 1], [], []>} : vector<56x256xbf16>, vector<256x256xbf16>, vector<56x256xf32> -> vector<56x256xf32>
    %c0_9 = arith.constant 0 : index
    %c0_10 = arith.constant 0 : index
    %12 = vector.load %arg5[%c0_9, %c0_10] : memref<1x256xf32, #tpu.memory_space<vmem>>, vector<1x256xf32>
    %13 = vector.broadcast %12 : vector<1x256xf32> to vector<56x256xf32>
    %14 = arith.addf %11, %13 : vector<56x256xf32>
    %cst_11 = arith.constant 0.000000e+00 : f32
    %15 = vector.broadcast %cst_11 : f32 to vector<56x256xf32>
    %16 = arith.maximumf %14, %15 : vector<56x256xf32>
    %17 = arith.truncf %16 : vector<56x256xf32> to vector<56x256xbf16>
    %c0_12 = arith.constant 0 : index
    %c0_13 = arith.constant 0 : index
    %18 = vector.load %arg6[%c0_12, %c0_13] : memref<256x128xbf16, #tpu.memory_space<vmem>>, vector<256x128xbf16>
    %cst_14 = arith.constant dense<0.000000e+00> : vector<56x128xf32>
    %19 = tpu.matmul %17, %18, %cst_14 {dimension_numbers = #tpu.dot_dimension_numbers<[1], [0], [0], [1], [0, 0, 1, 1], [], []>} : vector<56x256xbf16>, vector<256x128xbf16>, vector<56x128xf32> -> vector<56x128xf32>
    %c0_15 = arith.constant 0 : index
    %c0_16 = arith.constant 0 : index
    %20 = vector.load %arg7[%c0_15, %c0_16] : memref<1x128xf32, #tpu.memory_space<vmem>>, vector<1x128xf32>
    %21 = vector.broadcast %20 : vector<1x128xf32> to vector<56x128xf32>
    %22 = arith.addf %19, %21 : vector<56x128xf32>
    %c0_17 = arith.constant 0 : index
    %c0_18 = arith.constant 0 : index
    %23 = vector.load %arg8[%c0_17, %c0_18] : memref<56x128xf32, #tpu.memory_space<vmem>>, vector<56x128xf32>
    tpu.vector_store %arg8[%c0_17, %c0_18], %22 {strides = array<i32>} : memref<56x128xf32, #tpu.memory_space<vmem>>, vector<56x128xf32>,
    return
  }
  func.func @transform_0(%arg0: i32) -> (i32, i32) {
    %c0_i32 = arith.constant 0 : i32
    %c0_i32_0 = arith.constant 0 : i32
    return %arg0, %c0_i32 : i32, i32
  }
  func.func @transform_1(%arg0: i32) -> (i32, i32) {
    %c0_i32 = arith.constant 0 : i32
    %c0_i32_0 = arith.constant 0 : i32
    %c0_i32_1 = arith.constant 0 : i32
    return %c0_i32, %c0_i32_0 : i32, i32
  }
  func.func @transform_2(%arg0: i32) -> (i32, i32) {
    %c0_i32 = arith.constant 0 : i32
    %c0_i32_0 = arith.constant 0 : i32
    %c0_i32_1 = arith.constant 0 : i32
    return %c0_i32, %c0_i32_0 : i32, i32
  }
  func.func @transform_3(%arg0: i32) -> (i32, i32) {
    %c0_i32 = arith.constant 0 : i32
    %c0_i32_0 = arith.constant 0 : i32
    %c0_i32_1 = arith.constant 0 : i32
    return %c0_i32, %c0_i32_0 : i32, i32
  }
  func.func @transform_4(%arg0: i32) -> (i32, i32) {
    %c0_i32 = arith.constant 0 : i32
    %c0_i32_0 = arith.constant 0 : i32
    %c0_i32_1 = arith.constant 0 : i32
    return %c0_i32, %c0_i32_0 : i32, i32
  }
  func.func @transform_5(%arg0: i32) -> (i32, i32) {
    %c0_i32 = arith.constant 0 : i32
    %c0_i32_0 = arith.constant 0 : i32
    %c0_i32_1 = arith.constant 0 : i32
    return %c0_i32, %c0_i32_0 : i32, i32
  }
  func.func @transform_6(%arg0: i32) -> (i32, i32) {
    %c0_i32 = arith.constant 0 : i32
    %c0_i32_0 = arith.constant 0 : i32
    %c0_i32_1 = arith.constant 0 : i32
    return %c0_i32, %c0_i32_0 : i32, i32
  }
  func.func @transform_7(%arg0: i32) -> (i32, i32) {
    %c0_i32 = arith.constant 0 : i32
    %c0_i32_0 = arith.constant 0 : i32
    return %arg0, %c0_i32 : i32, i32
  }
}

</mosaic_0001>

<bundles_post_ra>
// kernel: tpu_custom_call.1
= control target key start
LH: loop header
LB: loop body
LE: loop exit
PB: predicated region body
PF: predicated region fallthrough
CT: control target
= control target key end

     0   :  { %12 = vsyncpa [#allocation3], 0  ;;  %s1102_s0 = inlined_call_operand.vmem [shape: f32[56,16], index: 0, kind: input, shape index: {}]   ;;  %s1103_s1 = inlined_call_operand.vmem [shape: bf16[16,256], index: 1, kind: input, shape index: {}]   ;;  %s1104_s2 = inlined_call_operand.vmem [shape: f32[1,256], index: 2, kind: input, shape index: {}]   ;;  %s1105_s3 = inlined_call_operand.hbm [shape: bf16[256,256], index: 3, kind: input, shape index: {}]   ;;  %s1106_s4 = inlined_call_operand.vmem [shape: f32[1,256], index: 4, kind: input, shape index: {}]   ;;  %s1107_s5 = inlined_call_operand.hbm [shape: bf16[256,128], index: 5, kind: input, shape index: {}]   ;;  %s1108_s6 = inlined_call_operand.vmem [shape: f32[1,128], index: 6, kind: input, shape index: {}]   ;;  %s1109_s7 = inlined_call_operand.hbm [shape: f32[56,128], index: 7, kind: output, shape index: {}]  }
   0x1   :  { %13 = vsyncpa [#allocation6], 0 }
   0x2   :  { %14 = vsyncpa [#allocation4], 0  ;;  %s960_s24 = smov [#allocation2]   ;;  %s888_s28 = scalar_lea.hbm %s1105_s3, 4096 }
   0x3   :  { %s26_s25 = sshll.u32 %s960_s24, 4  ;;  %p889_p0 = scmp.ne.s32.totalorder %s1105_s3, %s888_s28  ;;  %s27_s25 = int_to_ptr.vmem [resolvable:$true] %s26_s25 }
   0x4   :  { %p892_p1 = scmp.lt.u32.totalorder %s888_s28, %s1105_s3 }
   0x6   :  { %p894_p2 = pnand %p892_p1, %p889_p0 }
   0x8   :  { %897 = shalt.err (!%p894_p2)
}
   0x9   :  { %s898_s10 = scalar_lea.vmem %s27_s25, 4096  ;;  %p903_p4 = scmp.lt.s32.totalorder %s27_s25, %s27_s25 }
   0xa   :  { %p899_p3 = scmp.ne.s32.totalorder %s27_s25, %s898_s10  ;;  %p904_p5 = scmp.lt.s32.totalorder %s898_s10, %s898_s10 }
   0xc   :  { %p905_p6 = por %p904_p5, %p903_p4 }
   0xe   :  { %p906_p7 = pnand %p905_p6, %p899_p3 }
  0x10   :  { %909 = shalt.err (!%p906_p7)
}
  0x11   :  { %s961_s11 = smov 128   ;;  %s962_s12 = smov 8  }
  0x12   :  { %32 = dma.hbm_to_vmem [thread:$0]  %s1105_s3, 4096, %s27_s25, [#allocation3], %s961_s11, %s961_s11, %s962_s12  }
  0x13   :  { %s963_s15 = smov [#allocation5]   ;;  %s910_s19 = scalar_lea.hbm %s1107_s5, 2048 }
  0x14   :  { %s40_s16 = sshll.u32 %s963_s15, 4  ;;  %p911_p8 = scmp.ne.s32.totalorder %s1107_s5, %s910_s19  ;;  %s41_s16 = int_to_ptr.vmem [resolvable:$true] %s40_s16 }
  0x15   :  { %p914_p9 = scmp.lt.u32.totalorder %s910_s19, %s1107_s5 }
  0x17   :  { %p916_p10 = pnand %p914_p9, %p911_p8 }
  0x19   :  { %919 = shalt.err (!%p916_p10)
}
  0x1a   :  { %s920_s24 = scalar_lea.vmem %s41_s16, 2048  ;;  %p925_p12 = scmp.lt.s32.totalorder %s41_s16, %s41_s16 }
  0x1b   :  { %p921_p11 = scmp.ne.s32.totalorder %s41_s16, %s920_s24  ;;  %p926_p13 = scmp.lt.s32.totalorder %s920_s24, %s920_s24 }
  0x1d   :  { %p927_p0 = por %p926_p13, %p925_p12 }
  0x1f   :  { %p928_p1 = pnand %p927_p0, %p921_p11 }
  0x21   :  { %931 = shalt.err (!%p928_p1)
}
  0x22   :  { %s964_s3 = smov 64   ;;  %s965_s25 = smov 4  }
  0x23   :  { %46 = dma.hbm_to_vmem [thread:$0]  %s1107_s5, 2048, %s41_s16, [#allocation6], %s964_s3, %s964_s3, %s965_s25  }
  0x24   :  { %954 = dma.done.wait [#allocation3], 4096  }
  0x25   :  { %955 = vsyncadd [#allocation3], 4294963200 }
  0x26   :  { %956 = dma.done.wait [#allocation6], 2048  }
  0x27   :  { %957 = vsyncadd [#allocation6], 4294965248  ;;  %v966_v0 = vmov 0   ;;  %v821_v1 = vld [vmem:[%s1103_s1 + $0x4] ss:$8 sps:$4 sm:$0xff]   ;;  %vm91_vm0 = vcmask 130048   ;;  %v71_v58 = vlaneseq }
  0x28   :  { %136 = vmatprep.mubr.bf16.mxu0 %v966_v0  ;;  %v823_v2 = vld [vmem:[%s1103_s1] ss:$8 sps:$4 sm:$0xff]   ;;  %104 = vmatprep.subr.bf16.mxu0 %v821_v1  ;;  %v824_v6 = vld [vmem:[#allocation2 + $0x4] ss:$8 sps:$4 sm:$0xff]   ;;  %v827_v8 = vld [vmem:[#allocation2 + $0x14] ss:$8 sps:$4 sm:$0xff]  }
  0x29   :  { %v56_v3 = vld [vmem:[%s1102_s0] sm:$0xff]  ;;  %v57_v4 = vld [vmem:[%s1102_s0 + $0x8] sm:$0xff]  ;;  %105 = vmatpush1.bf16.msra.mxu0 %v823_v2  ;;  %v58_v9 = vld [vmem:[%s1102_s0 + $0x10] sm:$0xff]  ;;  %401 = vmatprep.subr.bf16.mxu1 %v824_v6  ;;  %v1066_v59 = vshrl.u32 %v71_v58, 7 }
  0x2a   :  { %v63_v5 = vpack.c.bf16 %v57_v4, %v56_v3  ;;  %v826_v7 = vld [vmem:[#allocation2] ss:$8 sps:$4 sm:$0xff]   ;;  %v59_v10 = vld [vmem:[%s1102_s0 + $0x18] sm:$0xff]  ;;  %v830_v12 = vld [vmem:[#allocation2 + $0x24] ss:$8 sps:$4 sm:$0xff]  }
  0x2b   :  { %402 = vmatpush1.bf16.msra.mxu1 %v826_v7  ;;  %v829_v11 = vld [vmem:[#allocation2 + $0x10] ss:$8 sps:$4 sm:$0xff]   ;;  %v64_v13 = vpack.c.bf16 %v59_v10, %v58_v9  ;;  %v832_v14 = vld [vmem:[#allocation2 + $0x20] ss:$8 sps:$4 sm:$0xff]   ;;  %v833_v15 = vld [vmem:[#allocation2 + $0x34] ss:$8 sps:$4 sm:$0xff]  }
  0x2c   :  { %720 = vmatmul.mubr.msk.bf16.vlgmr.msra.gmra.mrb[0].mxu0 %vm91_vm0, %v63_v5  ;;  %403 = vmatprep.subr.bf16.mxu1 %v827_v8  ;;  %v60_v16 = vld [vmem:[%s1102_s0 + $0x20] sm:$0xff]  ;;  %v61_v17 = vld [vmem:[%s1102_s0 + $0x28] sm:$0xff]  ;;  %v835_v18 = vld [vmem:[#allocation2 + $0x30] ss:$8 sps:$4 sm:$0xff]   ;;  %v73_v60 = vsub.s32 0, %v1066_v59  ;;  %v77_v62 = vsub.s32 1, %v1066_v59 }
  0x2d   :  { %146 = vmatprep.mubr.bf16.mxu0 %v966_v0  ;;  %v836_v19 = vld [vmem:[#allocation2 + $0x44] ss:$8 sps:$4 sm:$0xff]   ;;  %v65_v20 = vpack.c.bf16 %v61_v17, %v60_v16  ;;  %v838_v21 = vld [vmem:[#allocation2 + $0x40] ss:$8 sps:$4 sm:$0xff]   ;;  %v839_v22 = vld [vmem:[#allocation2 + $0x54] ss:$8 sps:$4 sm:$0xff]  }
  0x2e   :  { %v62_v23 = vld [vmem:[%s1102_s0 + $0x30] sm:$0xff]  ;;  %v842_v25 = vld [vmem:[#allocation2 + $0x64] ss:$8 sps:$4 sm:$0xff]   ;;  %v844_v26 = vld [vmem:[#allocation2 + $0x60] ss:$8 sps:$4 sm:$0xff]  }
  0x2f   :  { %404 = vmatpush1.bf16.msra.mxu1 %v829_v11  ;;  %v841_v24 = vld [vmem:[#allocation2 + $0x50] ss:$8 sps:$4 sm:$0xff]   ;;  %v66_v27 = vpack.c.bf16 %v62_v23, %v62_v23  ;;  %v845_v28 = vld [vmem:[#allocation2 + $0x74] ss:$8 sps:$4 sm:$0xff]   ;;  %v848_v30 = vld [vmem:[#allocation2 + $0x84] ss:$8 sps:$4 sm:$0xff]  }
  0x30   :  { %405 = vmatprep.subr.bf16.mxu1 %v830_v12  ;;  %v847_v29 = vld [vmem:[#allocation2 + $0x70] ss:$8 sps:$4 sm:$0xff]   ;;  %v850_v31 = vld [vmem:[#allocation2 + $0x80] ss:$8 sps:$4 sm:$0xff]   ;;  %v851_v32 = vld [vmem:[#allocation2 + $0x94] ss:$8 sps:$4 sm:$0xff]  }
  0x31   :  { %v853_v33 = vld [vmem:[#allocation2 + $0x90] ss:$8 sps:$4 sm:$0xff]   ;;  %v854_v34 = vld [vmem:[#allocation2 + $0xa4] ss:$8 sps:$4 sm:$0xff]   ;;  %v856_v35 = vld [vmem:[#allocation2 + $0xa0] ss:$8 sps:$4 sm:$0xff]  }
  0x32   :  { %v857_v36 = vld [vmem:[#allocation2 + $0xb4] ss:$8 sps:$4 sm:$0xff]   ;;  %v859_v37 = vld [vmem:[#allocation2 + $0xb0] ss:$8 sps:$4 sm:$0xff]   ;;  %v860_v38 = vld [vmem:[#allocation2 + $0xc4] ss:$8 sps:$4 sm:$0xff]  }
  0x33   :  { %406 = vmatpush1.bf16.msra.mxu1 %v832_v14  ;;  %v862_v39 = vld [vmem:[#allocation2 + $0xc0] ss:$8 sps:$4 sm:$0xff]   ;;  %v863_v40 = vld [vmem:[#allocation2 + $0xd4] ss:$8 sps:$4 sm:$0xff]   ;;  %v865_v41 = vld [vmem:[#allocation2 + $0xd0] ss:$8 sps:$4 sm:$0xff]  }
  0x34   :  { %721 = vmatmul.mubr.msk.bf16.gmra.mrb[4].mxu0 %vm91_vm0, %v64_v13  ;;  %407 = vmatprep.subr.bf16.mxu1 %v833_v15  ;;  %v866_v42 = vld [vmem:[#allocation2 + $0xe4] ss:$8 sps:$4 sm:$0xff]   ;;  %v868_v43 = vld [vmem:[#allocation2 + $0xe0] ss:$8 sps:$4 sm:$0xff]   ;;  %v869_v44 = vld [vmem:[#allocation2 + $0xf4] ss:$8 sps:$4 sm:$0xff]  }
  0x35   :  { %156 = vmatprep.mubr.bf16.mxu0 %v966_v0  ;;  %v871_v45 = vld [vmem:[#allocation2 + $0xf0] ss:$8 sps:$4 sm:$0xff]   ;;  %v872_v46 = vld [vmem:[#allocation5 + $0x40] sm:$0xff]   ;;  %v874_v48 = vld [vmem:[#allocation5 + $0x48] sm:$0xff]  }
  0x36   :  { %v873_v47 = vld [vmem:[#allocation5] sm:$0xff]   ;;  %773 = vmatprep.subr.bf16.mxu0 %v872_v46  ;;  %v875_v49 = vld [vmem:[#allocation5 + $0x8] sm:$0xff]   ;;  %v876_v50 = vld [vmem:[#allocation5 + $0x50] sm:$0xff]  }
  0x37   :  { %408 = vmatpush1.bf16.msra.mxu1 %v835_v18  ;;  %774 = vmatpush3.bf16.msra.mxu0 %v873_v47  ;;  %v877_v51 = vld [vmem:[#allocation5 + $0x10] sm:$0xff]   ;;  %v878_v52 = vld [vmem:[#allocation5 + $0x58] sm:$0xff]   ;;  %v880_v54 = vld [vmem:[#allocation5 + $0x60] sm:$0xff]  }
  0x38   :  { %409 = vmatprep.subr.bf16.mxu1 %v836_v19  ;;  %775 = vmatprep.subr.bf16.mxu0 %v874_v48  ;;  %v879_v53 = vld [vmem:[#allocation5 + $0x18] sm:$0xff]   ;;  %v881_v55 = vld [vmem:[#allocation5 + $0x20] sm:$0xff]   ;;  %v882_v56 = vld [vmem:[#allocation5 + $0x68] sm:$0xff]  }
  0x39   :  { %v883_v57 = vld [vmem:[#allocation5 + $0x28] sm:$0xff]   ;;  %v69_v61 = vld [vmem:[%s1104_s2] sm:$0x3] }
  0x3a   :  { %v74_v63 = vrot.slane %v69_v61, %v73_v60 }
  0x3b   :  { %410 = vmatpush1.bf16.msra.mxu1 %v838_v21  ;;  %776 = vmatpush3.bf16.msra.mxu0 %v875_v49 }
  0x3c   :  { %722 = vmatmul.mubr.msk.bf16.gmra.mrb[8].mxu0 %vm91_vm0, %v65_v20  ;;  %411 = vmatprep.subr.bf16.mxu1 %v839_v22 }
  0x3d   :  { %166 = vmatprep.mubr.bf16.mxu0 %v966_v0  ;;  %777 = vmatprep.subr.bf16.mxu0 %v876_v50  ;;  %v78_v0 = vrot.slane %v69_v61, %v77_v62 }
  0x3f   :  { %412 = vmatpush1.bf16.msra.mxu1 %v841_v24  ;;  %778 = vmatpush3.bf16.msra.mxu0 %v877_v51 }
  0x40   :  { %413 = vmatprep.subr.bf16.mxu1 %v842_v25  ;;  %779 = vmatprep.subr.bf16.mxu0 %v878_v52 }
  0x43   :  { %414 = vmatpush1.bf16.msra.mxu1 %v844_v26  ;;  %780 = vmatpush3.bf16.msra.mxu0 %v879_v53  ;;  %v884_v53 = vld [vmem:[#allocation5 + $0x70] sm:$0xff]  }
  0x44   :  { %723 = vmatmul.mubr.msk.bf16.gmra.mrb[12].mxu0 %vm91_vm0, %v66_v27  ;;  %415 = vmatprep.subr.bf16.mxu1 %v845_v28 }
  0x45   :  { %781 = vmatprep.subr.bf16.mxu0 %v880_v54  ;;  %v885_v54 = vld [vmem:[#allocation5 + $0x30] sm:$0xff]  }
  0x47   :  { %416 = vmatpush1.bf16.msra.mxu1 %v847_v29  ;;  %782 = vmatpush3.bf16.msra.mxu0 %v881_v55  ;;  %v886_v55 = vld [vmem:[#allocation5 + $0x78] sm:$0xff]  }
  0x48   :  { %417 = vmatprep.subr.bf16.mxu1 %v848_v30  ;;  %783 = vmatprep.subr.bf16.mxu0 %v882_v56  ;;  %v887_v56 = vld [vmem:[#allocation5 + $0x38] sm:$0xff]  }
  0x4b   :  { %418 = vmatpush1.bf16.msra.mxu1 %v850_v31  ;;  %784 = vmatpush3.bf16.msra.mxu0 %v883_v57  ;;  %v229_v57 = vld [vmem:[%s1106_s4] sm:$0x3] }
  0x4c   :  { %419 = vmatprep.subr.bf16.mxu1 %v851_v32  ;;  %785 = vmatprep.subr.bf16.mxu0 %v884_v53  ;;  %v234_v58 = vrot.slane %v229_v57, %v73_v60  ;;  %v238_v61 = vrot.slane %v229_v57, %v77_v62 }
  0x4f   :  { %420 = vmatpush1.bf16.msra.mxu1 %v853_v33  ;;  %786 = vmatpush3.bf16.msra.mxu0 %v885_v54 }
  0x50   :  { %421 = vmatprep.subr.bf16.mxu1 %v854_v34  ;;  %787 = vmatprep.subr.bf16.mxu0 %v886_v55 }
  0x53   :  { %422 = vmatpush1.bf16.msra.mxu1 %v856_v35  ;;  %788 = vmatpush3.bf16.msra.mxu0 %v887_v56 }
  0x54   :  { %423 = vmatprep.subr.bf16.mxu1 %v857_v36 }
  0x57   :  { %424 = vmatpush1.bf16.msra.mxu1 %v859_v37 }
  0x58   :  { %425 = vmatprep.subr.bf16.mxu1 %v860_v38 }
  0x5b   :  { %426 = vmatpush1.bf16.msra.mxu1 %v862_v39 }
  0x5c   :  { %427 = vmatprep.subr.bf16.mxu1 %v863_v40 }
  0x5f   :  { %428 = vmatpush1.bf16.msra.mxu1 %v865_v41 }
  0x60   :  { %429 = vmatprep.subr.bf16.mxu1 %v866_v42 }
  0x63   :  { %430 = vmatpush1.bf16.msra.mxu1 %v868_v43 }
  0x64   :  { %431 = vmatprep.subr.bf16.mxu1 %v869_v44 }
  0x67   :  { %432 = vmatpush1.bf16.msra.mxu1 %v871_v45 }
  0xff   :  { %v138_v1 = vpop.f32.mrb[0].mxu0 }
 0x100   :  { %v139_v2 = vadd.f32 %v138_v1, %v74_v63  ;;  %v140_v3 = vpop.f32.mrb[1].mxu0 }
 0x101   :  { %v141_v4 = vadd.f32 %v140_v3, %v78_v0  ;;  %v142_v5 = vpop.f32.mrb[2].mxu0 }
 0x102   :  { %v143_v6 = vadd.f32 %v142_v5, %v74_v63  ;;  %v144_v7 = vpop.f32.mrb[3].mxu0  ;;  %v175_v9 = vmax.f32 %v139_v2, 0.0 }
 0x103   :  { %v145_v8 = vadd.f32 %v144_v7, %v78_v0  ;;  %v176_v11 = vmax.f32 %v141_v4, 0.0 }
 0x104   :  { %v177_v10 = vmax.f32 %v143_v6, 0.0 }
 0x105   :  { %v178_v12 = vmax.f32 %v145_v8, 0.0 }
 0x106   :  { %v189_v13 = vpack.c.bf16 %v177_v10, %v175_v9 }
 0x107   :  { %v148_v14 = vpop.f32.mrb[4].mxu0  ;;  %v190_v15 = vpack.c.bf16 %v178_v12, %v176_v11 }
 0x108   :  { %v149_v16 = vadd.f32 %v148_v14, %v74_v63  ;;  %v150_v17 = vpop.f32.mrb[5].mxu0 }
 0x109   :  { %v151_v18 = vadd.f32 %v150_v17, %v78_v0  ;;  %v152_v19 = vpop.f32.mrb[6].mxu0  ;;  %433 = vmatprep.mubr.bf16.mxu1 %v190_v15 }
 0x10a   :  { %v153_v20 = vadd.f32 %v152_v19, %v74_v63  ;;  %v154_v21 = vpop.f32.mrb[7].mxu0  ;;  %434 = vmatmul.mubr.bf16.vlgmr.msra.gmra.mrb[0].mxu1 %v189_v13  ;;  %v179_v23 = vmax.f32 %v149_v16, 0.0 }
 0x10b   :  { %v155_v22 = vadd.f32 %v154_v21, %v78_v0  ;;  %v180_v25 = vmax.f32 %v151_v18, 0.0 }
 0x10c   :  { %v181_v24 = vmax.f32 %v153_v20, 0.0 }
 0x10d   :  { %v182_v26 = vmax.f32 %v155_v22, 0.0 }
 0x10e   :  { %v191_v27 = vpack.c.bf16 %v181_v24, %v179_v23 }
 0x10f   :  { %v192_v28 = vpack.c.bf16 %v182_v26, %v180_v25  ;;  %v158_v29 = vpop.f32.mrb[8].mxu0 }
 0x110   :  { %v159_v30 = vadd.f32 %v158_v29, %v74_v63  ;;  %v160_v31 = vpop.f32.mrb[9].mxu0 }
 0x111   :  { %v161_v32 = vadd.f32 %v160_v31, %v78_v0  ;;  %v162_v33 = vpop.f32.mrb[10].mxu0  ;;  %443 = vmatprep.mubr.bf16.mxu1 %v192_v28 }
 0x112   :  { %v163_v34 = vadd.f32 %v162_v33, %v74_v63  ;;  %v164_v35 = vpop.f32.mrb[11].mxu0  ;;  %444 = vmatmul.mubr.bf16.gmra.mrb[4].mxu1 %v191_v27  ;;  %v183_v37 = vmax.f32 %v159_v30, 0.0 }
 0x113   :  { %v165_v36 = vadd.f32 %v164_v35, %v78_v0  ;;  %v184_v39 = vmax.f32 %v161_v32, 0.0 }
 0x114   :  { %v185_v38 = vmax.f32 %v163_v34, 0.0 }
 0x115   :  { %v186_v40 = vmax.f32 %v165_v36, 0.0 }
 0x116   :  { %v193_v41 = vpack.c.bf16 %v185_v38, %v183_v37 }
 0x117   :  { %v194_v42 = vpack.c.bf16 %v186_v40, %v184_v39  ;;  %v168_v43 = vpop.f32.mrb[12].mxu0 }
 0x118   :  { %v169_v44 = vadd.f32 %v168_v43, %v74_v63  ;;  %v170_v45 = vpop.f32.mrb[13].mxu0 }
 0x119   :  { %v171_v46 = vadd.f32 %v170_v45, %v78_v0  ;;  %453 = vmatprep.mubr.bf16.mxu1 %v194_v42  ;;  %v172_v47 = vpop.f32.mrb[14].mxu0 }
 0x11a   :  { %v187_v48 = vmax.f32 %v169_v44, 0.0  ;;  %454 = vmatmul.mubr.bf16.gmra.mrb[8].mxu1 %v193_v41  ;;  %v173_v49 = vpop.f32.mrb[15].mxu0 }
 0x11b   :  { %v188_v50 = vmax.f32 %v171_v46, 0.0  ;;  %v756_v49 = vld [vmem:[%s1108_s6] ss:$0 sm:$0xff]  ;;  %s967_s6 = smov [#allocation7]  }
 0x11c   :  { %v195_v52 = vpack.c.bf16 %v187_v48, %v187_v48  ;;  %s705_s25 = sshll.u32 %s967_s6, 4  ;;  %s706_s25 = int_to_ptr.vmem [resolvable:$true] %s705_s25 }
 0x11d   :  { %v196_v51 = vpack.c.bf16 %v188_v50, %v188_v50  ;;  %s932_s26 = scalar_lea.vmem %s706_s25, 896  ;;  %p937_p3 = scmp.lt.s32.totalorder %s706_s25, %s706_s25 }
 0x11e   :  { %p933_p2 = scmp.ne.s32.totalorder %s706_s25, %s932_s26  ;;  %p938_p4 = scmp.lt.s32.totalorder %s932_s26, %s932_s26 }
 0x11f   :  { %463 = vmatprep.mubr.bf16.mxu1 %v196_v51 }
 0x120   :  { %p939_p5 = por %p938_p4, %p937_p3 }
 0x122   :  { %464 = vmatmul.mubr.bf16.gmra.mrb[12].mxu1 %v195_v52  ;;  %p940_p6 = pnand %p939_p5, %p933_p2 }
 0x1dd   :  { %v435_v63 = vpop.f32.mrb[0].mxu1 }
 0x1de   :  { %v436_v0 = vadd.f32 %v435_v63, %v234_v58  ;;  %v437_v1 = vpop.f32.mrb[1].mxu1 }
 0x1df   :  { %v438_v2 = vadd.f32 %v437_v1, %v238_v61  ;;  %v439_v3 = vpop.f32.mrb[2].mxu1 }
 0x1e0   :  { %v440_v4 = vadd.f32 %v439_v3, %v234_v58  ;;  %v441_v5 = vpop.f32.mrb[3].mxu1  ;;  %v472_v7 = vmax.f32 %v436_v0, 0.0 }
 0x1e1   :  { %v442_v6 = vadd.f32 %v441_v5, %v238_v61  ;;  %v473_v9 = vmax.f32 %v438_v2, 0.0 }
 0x1e2   :  { %v474_v8 = vmax.f32 %v440_v4, 0.0 }
 0x1e3   :  { %v475_v10 = vmax.f32 %v442_v6, 0.0 }
 0x1e4   :  { %v486_v11 = vpack.c.bf16 %v474_v8, %v472_v7 }
 0x1e5   :  { %v487_v12 = vpack.c.bf16 %v475_v10, %v473_v9  ;;  %v445_v13 = vpop.f32.mrb[4].mxu1 }
 0x1e6   :  { %v446_v14 = vadd.f32 %v445_v13, %v234_v58  ;;  %v447_v60 = vpop.f32.mrb[5].mxu1 }
 0x1e7   :  { %v448_v15 = vadd.f32 %v447_v60, %v238_v61  ;;  %v449_v59 = vpop.f32.mrb[6].mxu1  ;;  %661 = vmatprep.mubr.bf16.mxu0 %v487_v12 }
 0x1e8   :  { %v450_v62 = vadd.f32 %v449_v59, %v234_v58  ;;  %v451_v16 = vpop.f32.mrb[7].mxu1  ;;  %662 = vmatmul.mubr.bf16.vlgmr.msra.gmra.mrb[16].mxu0 %v486_v11  ;;  %v476_v18 = vmax.f32 %v446_v14, 0.0 }
 0x1e9   :  { %v452_v17 = vadd.f32 %v451_v16, %v238_v61  ;;  %v477_v20 = vmax.f32 %v448_v15, 0.0 }
 0x1ea   :  { %v478_v19 = vmax.f32 %v450_v62, 0.0 }
 0x1eb   :  { %v479_v21 = vmax.f32 %v452_v17, 0.0 }
 0x1ec   :  { %v488_v22 = vpack.c.bf16 %v478_v19, %v476_v18 }
 0x1ed   :  { %v489_v23 = vpack.c.bf16 %v479_v21, %v477_v20  ;;  %v455_v24 = vpop.f32.mrb[8].mxu1 }
 0x1ee   :  { %v456_v25 = vadd.f32 %v455_v24, %v234_v58  ;;  %v457_v26 = vpop.f32.mrb[9].mxu1 }
 0x1ef   :  { %v458_v27 = vadd.f32 %v457_v26, %v238_v61  ;;  %v459_v28 = vpop.f32.mrb[10].mxu1  ;;  %669 = vmatprep.mubr.bf16.mxu0 %v489_v23 }
 0x1f0   :  { %v460_v29 = vadd.f32 %v459_v28, %v234_v58  ;;  %v461_v30 = vpop.f32.mrb[11].mxu1  ;;  %670 = vmatmul.mubr.bf16.gmra.mrb[20].mxu0 %v488_v22  ;;  %v480_v32 = vmax.f32 %v456_v25, 0.0 }
 0x1f1   :  { %v462_v31 = vadd.f32 %v461_v30, %v238_v61  ;;  %v481_v34 = vmax.f32 %v458_v27, 0.0 }
 0x1f2   :  { %v482_v33 = vmax.f32 %v460_v29, 0.0 }
 0x1f3   :  { %v483_v35 = vmax.f32 %v462_v31, 0.0 }
 0x1f4   :  { %v490_v36 = vpack.c.bf16 %v482_v33, %v480_v32 }
 0x1f5   :  { %v491_v37 = vpack.c.bf16 %v483_v35, %v481_v34  ;;  %v465_v38 = vpop.f32.mrb[12].mxu1 }
 0x1f6   :  { %v466_v39 = vadd.f32 %v465_v38, %v234_v58  ;;  %v467_v40 = vpop.f32.mrb[13].mxu1 }
 0x1f7   :  { %v468_v41 = vadd.f32 %v467_v40, %v238_v61  ;;  %v469_v42 = vpop.f32.mrb[14].mxu1  ;;  %677 = vmatprep.mubr.bf16.mxu0 %v491_v37 }
 0x1f8   :  { %v470_v43 = vpop.f32.mrb[15].mxu1  ;;  %678 = vmatmul.mubr.bf16.gmra.mrb[24].mxu0 %v490_v36  ;;  %v484_v45 = vmax.f32 %v466_v39, 0.0 }
 0x1f9   :  { %v485_v44 = vmax.f32 %v468_v41, 0.0 }
 0x1fa   :  { %v492_v47 = vpack.c.bf16 %v484_v45, %v484_v45 }
 0x1fb   :  { %v493_v46 = vpack.c.bf16 %v485_v44, %v485_v44 }
 0x1fd   :  { %685 = vmatprep.mubr.bf16.mxu0 %v493_v46 }
 0x200   :  { %686 = vmatmul.mubr.bf16.gmra.mrb[28].mxu0 %v492_v47 }
 0x2bb   :  { %v789_v48 = vpop.f32.mrb[16].mxu0 }
 0x2bc   :  { %v790_v50 = vpop.f32.mrb[17].mxu0 }
 0x2bd   :  { %v791_v51 = vadd.f32 %v790_v50, %v789_v48  ;;  %v792_v52 = vpop.f32.mrb[18].mxu0 }
 0x2be   :  { %v793_v53 = vpop.f32.mrb[19].mxu0 }
 0x2bf   :  { %v664_v54 = vadd.f32 %v791_v51, %v756_v49  ;;  %v794_v55 = vadd.f32 %v793_v53, %v792_v52 }
 0x2c1   :  { %693 = vst [vmem:[#allocation7] sm:$0xff] %v664_v54  ;;  %v667_v56 = vadd.f32 %v794_v55, %v756_v49 }
 0x2c3   :  { %694 = vst [vmem:[#allocation7 + $0x8] sm:$0xff] %v667_v56  ;;  %v795_v57 = vpop.f32.mrb[20].mxu0 }
 0x2c4   :  { %v796_v58 = vpop.f32.mrb[21].mxu0 }
 0x2c5   :  { %v797_v61 = vadd.f32 %v796_v58, %v795_v57  ;;  %v798_v63 = vpop.f32.mrb[22].mxu0 }
 0x2c6   :  { %v799_v0 = vpop.f32.mrb[23].mxu0 }
 0x2c7   :  { %v672_v1 = vadd.f32 %v797_v61, %v756_v49  ;;  %v800_v2 = vadd.f32 %v799_v0, %v798_v63 }
 0x2c9   :  { %695 = vst [vmem:[#allocation7 + $0x10] sm:$0xff] %v672_v1  ;;  %v675_v3 = vadd.f32 %v800_v2, %v756_v49 }
 0x2cb   :  { %696 = vst [vmem:[#allocation7 + $0x18] sm:$0xff] %v675_v3  ;;  %v801_v4 = vpop.f32.mrb[24].mxu0 }
 0x2cc   :  { %v802_v5 = vpop.f32.mrb[25].mxu0 }
 0x2cd   :  { %v803_v6 = vadd.f32 %v802_v5, %v801_v4  ;;  %v804_v7 = vpop.f32.mrb[26].mxu0 }
 0x2ce   :  { %v805_v8 = vpop.f32.mrb[27].mxu0 }
 0x2cf   :  { %v680_v9 = vadd.f32 %v803_v6, %v756_v49  ;;  %v806_v10 = vadd.f32 %v805_v8, %v804_v7 }
 0x2d1   :  { %697 = vst [vmem:[#allocation7 + $0x20] sm:$0xff] %v680_v9  ;;  %v683_v11 = vadd.f32 %v806_v10, %v756_v49 }
 0x2d3   :  { %698 = vst [vmem:[#allocation7 + $0x28] sm:$0xff] %v683_v11  ;;  %v807_v12 = vpop.f32.mrb[28].mxu0 }
 0x2d4   :  { %v808_v13 = vpop.f32.mrb[29].mxu0 }
 0x2d5   :  { %v809_v14 = vadd.f32 %v808_v13, %v807_v12  ;;  %v810_v60 = vpop.f32.mrb[30].mxu0 }
 0x2d6   :  { %v811_v15 = vpop.f32.mrb[31].mxu0 }
 0x2d7   :  { %v688_v59 = vadd.f32 %v809_v14, %v756_v49 }
 0x2d9   :  { %699 = vst [vmem:[#allocation7 + $0x30] sm:$0xff] %v688_v59 }
 0x2da   :  { %943 = shalt.err (!%p940_p6)
}
 0x2db   :  { %s944_s29 = scalar_lea.hbm %s1109_s7, 896 }
 0x2dc   :  { %p945_p7 = scmp.ne.s32.totalorder %s1109_s7, %s944_s29  ;;  %p948_p8 = scmp.lt.u32.totalorder %s944_s29, %s1109_s7 }
 0x2de   :  { %p950_p9 = pnand %p948_p8, %p945_p7 }
 0x2e0   :  { %953 = shalt.err (!%p950_p9)
}
 0x2e1   :  { %711 = dma.vmem_to_hbm [thread:$0]  %s706_s25, 896, %s1109_s7, [#allocation4], %s961_s11, %s961_s11, %s962_s12  }
 0x2e2   :  { %958 = dma.done.wait [#allocation4], 896  }
 0x2e3   :  { %959 = vsyncadd [#allocation4], 4294966400 }
 0x2e4   :  { %715 = vsyncpa [#allocation3], 1 }
 0x2e5   :  { %716 = vsyncpa [#allocation6], 1 }
 0x2e6   :  { %717 = vsyncpa [#allocation4], 1 }

</bundles_post_ra>
